<compile_context>
chip_gen: v7x
topology: tpu7x:2x2x1
jax: 0.10.0
libtpu: 0.0.40
codegen_flags: <defaults>
</compile_context>

<pallas_src>
import functools

import numpy as np
import jax
import jax.numpy as jnp
from jax.experimental import pallas as pl
from jax.experimental.pallas import tpu as pltpu


LANE = 128   # lane width: only the HBM-facing output is padded to this
HPAD = 32    # internal feature width = hidden_channels (in_channels zero-padded up to it)


# ----------------------------- Pallas kernel -------------------------------

def _gnn_fused_kernel(a_ref, x_ref, wslab_ref, bslab_ref, w2_ref, b2_ref, out_ref,
                      *, num_layers):
    f32 = jnp.float32
    a = a_ref[...]                                    # [N, N]
    h = x_ref[...]                                    # [N, HPAD]

    # SAGE layers: h <- lin_l(mean_aggr(h)) + lin_r(h)
    # wslab layout: [w_l0, w_r0, w_l1, w_r1, ..., w_lin1], each [HPAD, HPAD]
    # bslab layout: [b_l0, b_l1, ..., b_lin1], each [HPAD]
    for li in range(num_layers):
        agg = jnp.dot(a, h, preferred_element_type=f32)               # [N, HPAD]
        w_l = wslab_ref[2 * li]                                        # [HPAD, HPAD]
        w_r = wslab_ref[2 * li + 1]                                    # [HPAD, HPAD]
        b_l = bslab_ref[pl.ds(li, 1), :]                               # [1, HPAD]
        h = (jnp.dot(agg, w_l, preferred_element_type=f32)
             + jnp.dot(h, w_r, preferred_element_type=f32)
             + b_l)
        if li < num_layers - 1:
            h = jnp.maximum(h, 0.0)
            # TODO(synk): F.dropout only acts in training mode; inference path is identity.

    # MLP head: lin1 -> relu -> lin2 -> sigmoid
    h = (jnp.dot(h, wslab_ref[2 * num_layers], preferred_element_type=f32)
         + bslab_ref[pl.ds(num_layers, 1), :])
    h = jnp.maximum(h, 0.0)
    out = jnp.dot(h, w2_ref[...], preferred_element_type=f32) + b2_ref[...]   # [N, LANE]
    out_ref[...] = jax.nn.sigmoid(out).astype(out_ref.dtype)


def gnn_forward_fused(a_norm, x_pad, wslab, bslab, w2_pad, b2_pad, *, num_layers, n):
    kernel = functools.partial(_gnn_fused_kernel, num_layers=num_layers)
    inputs = [a_norm, x_pad, wslab, bslab, w2_pad, b2_pad]

    # Advisory cost estimate (padded dims).
    flops = num_layers * (2 * n * n * HPAD + 2 * (2 * n * HPAD * HPAD))
    flops += 2 * n * HPAD * HPAD + 2 * n * HPAD * LANE
    bytes_accessed = sum(int(np.prod(t.shape)) * t.dtype.itemsize for t in inputs)
    bytes_accessed += n * LANE * 4

    vmem = pl.BlockSpec(memory_space=pltpu.MemorySpace.VMEM)
    out_pad = pl.pallas_call(
        kernel,
        out_shape=jax.ShapeDtypeStruct((n, LANE), jnp.float32),
        in_specs=[vmem] * len(inputs),
        out_specs=vmem,
        cost_estimate=pl.CostEstimate(flops=flops,
                                      transcendentals=n * LANE,
                                      bytes_accessed=bytes_accessed),
    )(*inputs)
    return out_pad


# ------------------------------ parameters ---------------------------------

def _linear_init(key, fan_in, fan_out, bias=True):
    # torch.nn.Linear default init: U(-1/sqrt(fan_in), 1/sqrt(fan_in))
    kw, kb = jax.random.split(key)
    bound = 1.0 / np.sqrt(fan_in)
    w = jax.random.uniform(kw, (fan_in, fan_out), jnp.float32, -bound, bound)
    b = (jax.random.uniform(kb, (fan_out,), jnp.float32, -bound, bound)
         if bias else jnp.zeros((fan_out,), jnp.float32))
    return w, b


def init_params(key, in_channels, hidden_channels, out_channels, num_layers, in_dim):
    keys = jax.random.split(key, 3 + 2 * num_layers)
    params = {}
    # lin_skip exists on the module but (skip=None) its output never reaches the
    # forward result; it is initialized for fidelity and intentionally not used.
    params["lin_skip_w"], params["lin_skip_b"] = _linear_init(keys[0], in_dim, hidden_channels)

    convs = []
    c_in = in_channels
    for li in range(num_layers):
        w_l, b_l = _linear_init(keys[1 + 2 * li], c_in, hidden_channels, bias=True)
        w_r, _ = _linear_init(keys[2 + 2 * li], c_in, hidden_channels, bias=False)
        convs.append((w_l, b_l, w_r))
        c_in = hidden_channels
    params["convs"] = convs

    out_dim = hidden_channels  # skip=None -> out_dim = hidden_channels
    params["lin1_w"], params["lin1_b"] = _linear_init(keys[1 + 2 * num_layers], out_dim, hidden_channels)
    params["lin2_w"], params["lin2_b"] = _linear_init(keys[2 + 2 * num_layers], hidden_channels, out_channels)
    return params


def _pad_to(a, shape):
    return jnp.pad(a, [(0, s - d) for d, s in zip(a.shape, shape)])


def pack_params(params):
    """Stack all HPAD-wide weights into one slab and all biases into another;
    keep lin2 separately, lane-padded to LANE for a lane-dense final store."""
    wslab, bslab = [], []
    for (w_l, b_l, w_r) in params["convs"]:
        wslab.append(_pad_to(w_l, (HPAD, HPAD)))
        wslab.append(_pad_to(w_r, (HPAD, HPAD)))
        bslab.append(_pad_to(b_l, (HPAD,)))
    wslab.append(_pad_to(params["lin1_w"], (HPAD, HPAD)))
    bslab.append(_pad_to(params["lin1_b"], (HPAD,)))
    wslab = jnp.stack(wslab)                               # [2L+1, HPAD, HPAD]
    bslab = jnp.stack(bslab)                               # [L+1, HPAD]
    w2 = _pad_to(params["lin2_w"], (HPAD, LANE))           # [HPAD, LANE]
    b2 = _pad_to(params["lin2_b"].reshape(1, -1), (1, LANE))
    return wslab, bslab, w2, b2


# --------------------------------- main -------------------------------------

if __name__ == "__main__":
    N, E = 64, 128
    in_channels, hidden_channels, out_channels, num_layers = 16, 32, 8, 2
    in_dim = in_channels  # mask (x == 1.0).sum(0) != 1 selects all columns for N(0,1) input
    assert hidden_channels == HPAD and in_channels <= HPAD and out_channels <= LANE

    key = jax.random.PRNGKey(0)
    k_x, k_src, k_dst, k_p = jax.random.split(key, 4)

    x = jax.random.normal(k_x, (N, in_channels), dtype=jnp.float32)
    src = jax.random.randint(k_src, (E,), 0, N)
    dst = jax.random.randint(k_dst, (E,), 0, N)
    edge_index = jnp.stack([src, dst])  # [2, E], row 0 = source, row 1 = target

    # Glue: dense normalized adjacency for mean aggregation (A_norm @ X == scatter-mean).
    A = jnp.zeros((N, N), jnp.float32).at[dst, src].add(1.0)
    deg = A.sum(axis=1, keepdims=True)
    a_norm = jnp.where(deg > 0, A / jnp.maximum(deg, 1.0), 0.0)

    params = init_params(k_p, in_channels, hidden_channels, out_channels, num_layers, in_dim)
    wslab, bslab, w2_pad, b2_pad = pack_params(params)

    # Zero-pad node features once (XLA side) to the internal width.
    x_pad = _pad_to(x, (N, HPAD))

    out_pad = gnn_forward_fused(a_norm, x_pad, wslab, bslab, w2_pad, b2_pad,
                                num_layers=num_layers, n=N)
    out = out_pad[:, :out_channels]
    out = jax.block_until_ready(out)

    assert out.shape == (N, out_channels)
    assert bool(jnp.all((out >= 0.0) & (out <= 1.0)))  # sigmoid output range
    print("KERNEL_OK")
</pallas_src>

<mosaic_0001>
module attributes {stable_mosaic.version = 11 : i64} {
  func.func @_gnn_fused_kernel(%arg0: memref<64x64xf32, #tpu.memory_space<vmem>>, %arg1: memref<64x32xf32, #tpu.memory_space<vmem>>, %arg2: memref<5x32x32xf32, #tpu.memory_space<vmem>>, %arg3: memref<3x32xf32, #tpu.memory_space<vmem>>, %arg4: memref<32x128xf32, #tpu.memory_space<vmem>>, %arg5: memref<1x128xf32, #tpu.memory_space<vmem>>, %arg6: memref<64x128xf32, #tpu.memory_space<vmem>>) attributes {dimension_semantics = [], scalar_prefetch = 0 : i64, scratch_operands = 0 : i64, tpu.core_type = #tpu.core_type<tc>} {
    %c0 = arith.constant 0 : index
    %c0_0 = arith.constant 0 : index
    %0 = vector.load %arg0[%c0, %c0_0] : memref<64x64xf32, #tpu.memory_space<vmem>>, vector<64x64xf32>
    %c0_1 = arith.constant 0 : index
    %c0_2 = arith.constant 0 : index
    %1 = vector.load %arg1[%c0_1, %c0_2] : memref<64x32xf32, #tpu.memory_space<vmem>>, vector<64x32xf32>
    %cst = arith.constant dense<0.000000e+00> : vector<64x32xf32>
    %2 = tpu.matmul %0, %1, %cst {dimension_numbers = #tpu.dot_dimension_numbers<[1], [0], [0], [1], [0, 0, 1, 1], [], []>} : vector<64x64xf32>, vector<64x32xf32>, vector<64x32xf32> -> vector<64x32xf32>
    %c0_3 = arith.constant 0 : index
    %c0_4 = arith.constant 0 : index
    %c0_5 = arith.constant 0 : index
    %3 = vector.load %arg2[%c0_3, %c0_4, %c0_5] : memref<5x32x32xf32, #tpu.memory_space<vmem>>, vector<1x32x32xf32>
    %4 = vector.shape_cast %3 : vector<1x32x32xf32> to vector<32x32xf32>
    %c1 = arith.constant 1 : index
    %c0_6 = arith.constant 0 : index
    %c0_7 = arith.constant 0 : index
    %5 = vector.load %arg2[%c1, %c0_6, %c0_7] : memref<5x32x32xf32, #tpu.memory_space<vmem>>, vector<1x32x32xf32>
    %6 = vector.shape_cast %5 : vector<1x32x32xf32> to vector<32x32xf32>
    %c0_8 = arith.constant 0 : index
    %c0_9 = arith.constant 0 : index
    %7 = vector.load %arg3[%c0_8, %c0_9] : memref<3x32xf32, #tpu.memory_space<vmem>>, vector<1x32xf32>
    %cst_10 = arith.constant dense<0.000000e+00> : vector<64x32xf32>
    %8 = tpu.matmul %2, %4, %cst_10 {dimension_numbers = #tpu.dot_dimension_numbers<[1], [0], [0], [1], [0, 0, 1, 1], [], []>} : vector<64x32xf32>, vector<32x32xf32>, vector<64x32xf32> -> vector<64x32xf32>
    %cst_11 = arith.constant dense<0.000000e+00> : vector<64x32xf32>
    %9 = tpu.matmul %1, %6, %cst_11 {dimension_numbers = #tpu.dot_dimension_numbers<[1], [0], [0], [1], [0, 0, 1, 1], [], []>} : vector<64x32xf32>, vector<32x32xf32>, vector<64x32xf32> -> vector<64x32xf32>
    %10 = arith.addf %8, %9 : vector<64x32xf32>
    %11 = vector.broadcast %7 : vector<1x32xf32> to vector<64x32xf32>
    %12 = arith.addf %10, %11 : vector<64x32xf32>
    %cst_12 = arith.constant 0.000000e+00 : f32
    %13 = vector.broadcast %cst_12 : f32 to vector<64x32xf32>
    %14 = arith.maximumf %12, %13 : vector<64x32xf32>
    %cst_13 = arith.constant dense<0.000000e+00> : vector<64x32xf32>
    %15 = tpu.matmul %0, %14, %cst_13 {dimension_numbers = #tpu.dot_dimension_numbers<[1], [0], [0], [1], [0, 0, 1, 1], [], []>} : vector<64x64xf32>, vector<64x32xf32>, vector<64x32xf32> -> vector<64x32xf32>
    %c2 = arith.constant 2 : index
    %c0_14 = arith.constant 0 : index
    %c0_15 = arith.constant 0 : index
    %16 = vector.load %arg2[%c2, %c0_14, %c0_15] : memref<5x32x32xf32, #tpu.memory_space<vmem>>, vector<1x32x32xf32>
    %17 = vector.shape_cast %16 : vector<1x32x32xf32> to vector<32x32xf32>
    %c3 = arith.constant 3 : index
    %c0_16 = arith.constant 0 : index
    %c0_17 = arith.constant 0 : index
    %18 = vector.load %arg2[%c3, %c0_16, %c0_17] : memref<5x32x32xf32, #tpu.memory_space<vmem>>, vector<1x32x32xf32>
    %19 = vector.shape_cast %18 : vector<1x32x32xf32> to vector<32x32xf32>
    %c1_18 = arith.constant 1 : index
    %c0_19 = arith.constant 0 : index
    %20 = vector.load %arg3[%c1_18, %c0_19] : memref<3x32xf32, #tpu.memory_space<vmem>>, vector<1x32xf32>
    %cst_20 = arith.constant dense<0.000000e+00> : vector<64x32xf32>
    %21 = tpu.matmul %15, %17, %cst_20 {dimension_numbers = #tpu.dot_dimension_numbers<[1], [0], [0], [1], [0, 0, 1, 1], [], []>} : vector<64x32xf32>, vector<32x32xf32>, vector<64x32xf32> -> vector<64x32xf32>
    %cst_21 = arith.constant dense<0.000000e+00> : vector<64x32xf32>
    %22 = tpu.matmul %14, %19, %cst_21 {dimension_numbers = #tpu.dot_dimension_numbers<[1], [0], [0], [1], [0, 0, 1, 1], [], []>} : vector<64x32xf32>, vector<32x32xf32>, vector<64x32xf32> -> vector<64x32xf32>
    %23 = arith.addf %21, %22 : vector<64x32xf32>
    %24 = vector.broadcast %20 : vector<1x32xf32> to vector<64x32xf32>
    %25 = arith.addf %23, %24 : vector<64x32xf32>
    %c4 = arith.constant 4 : index
    %c0_22 = arith.constant 0 : index
    %c0_23 = arith.constant 0 : index
    %26 = vector.load %arg2[%c4, %c0_22, %c0_23] : memref<5x32x32xf32, #tpu.memory_space<vmem>>, vector<1x32x32xf32>
    %27 = vector.shape_cast %26 : vector<1x32x32xf32> to vector<32x32xf32>
    %cst_24 = arith.constant dense<0.000000e+00> : vector<64x32xf32>
    %28 = tpu.matmul %25, %27, %cst_24 {dimension_numbers = #tpu.dot_dimension_numbers<[1], [0], [0], [1], [0, 0, 1, 1], [], []>} : vector<64x32xf32>, vector<32x32xf32>, vector<64x32xf32> -> vector<64x32xf32>
    %c2_25 = arith.constant 2 : index
    %c0_26 = arith.constant 0 : index
    %29 = vector.load %arg3[%c2_25, %c0_26] : memref<3x32xf32, #tpu.memory_space<vmem>>, vector<1x32xf32>
    %30 = vector.broadcast %29 : vector<1x32xf32> to vector<64x32xf32>
    %31 = arith.addf %28, %30 : vector<64x32xf32>
    %cst_27 = arith.constant 0.000000e+00 : f32
    %32 = vector.broadcast %cst_27 : f32 to vector<64x32xf32>
    %33 = arith.maximumf %31, %32 : vector<64x32xf32>
    %c0_28 = arith.constant 0 : index
    %c0_29 = arith.constant 0 : index
    %34 = vector.load %arg4[%c0_28, %c0_29] : memref<32x128xf32, #tpu.memory_space<vmem>>, vector<32x128xf32>
    %cst_30 = arith.constant dense<0.000000e+00> : vector<64x128xf32>
    %35 = tpu.matmul %33, %34, %cst_30 {dimension_numbers = #tpu.dot_dimension_numbers<[1], [0], [0], [1], [0, 0, 1, 1], [], []>} : vector<64x32xf32>, vector<32x128xf32>, vector<64x128xf32> -> vector<64x128xf32>
    %c0_31 = arith.constant 0 : index
    %c0_32 = arith.constant 0 : index
    %36 = vector.load %arg5[%c0_31, %c0_32] : memref<1x128xf32, #tpu.memory_space<vmem>>, vector<1x128xf32>
    %37 = vector.broadcast %36 : vector<1x128xf32> to vector<64x128xf32>
    %38 = arith.addf %35, %37 : vector<64x128xf32>
    %39 = arith.negf %38 : vector<64x128xf32>
    %40 = math.exp %39 : vector<64x128xf32>
    %cst_33 = arith.constant 1.000000e+00 : f32
    %41 = vector.broadcast %cst_33 : f32 to vector<64x128xf32>
    %42 = arith.addf %41, %40 : vector<64x128xf32>
    %43 = arith.divf %41, %42 : vector<64x128xf32>
    %c0_34 = arith.constant 0 : index
    %c0_35 = arith.constant 0 : index
    %44 = vector.load %arg6[%c0_34, %c0_35] : memref<64x128xf32, #tpu.memory_space<vmem>>, vector<64x128xf32>
    tpu.vector_store %arg6[%c0_34, %c0_35], %43 {strides = array<i32>} : memref<64x128xf32, #tpu.memory_space<vmem>>, vector<64x128xf32>,
    return
  }
}

</mosaic_0001>

<bundles_post_ra>
// kernel: tpu_custom_call.1
= control target key start
LH: loop header
LB: loop body
LE: loop exit
PB: predicated region body
PF: predicated region fallthrough
CT: control target
= control target key end

     0   :  { %11 = vsyncpa [#allocation3], 0  ;;  %s1992_s0 = inlined_call_operand.vmem [shape: f32[64,64], index: 0, kind: input, shape index: {}]   ;;  %s1993_s1 = inlined_call_operand.vmem [shape: f32[64,32], index: 1, kind: input, shape index: {}]   ;;  %s1994_s2 = inlined_call_operand.hbm [shape: f32[5,32,32], index: 2, kind: input, shape index: {}]   ;;  %s1995_s3 = inlined_call_operand.vmem [shape: f32[3,32], index: 3, kind: input, shape index: {}]   ;;  %s1996_s4 = inlined_call_operand.vmem [shape: f32[32,128], index: 4, kind: input, shape index: {}]   ;;  %s1997_s5 = inlined_call_operand.vmem [shape: f32[1,128], index: 5, kind: input, shape index: {}]   ;;  %s1998_s6 = inlined_call_operand.hbm [shape: f32[64,128], index: 6, kind: output, shape index: {}]  }
   0x1   :  { %12 = vsyncpa [#allocation4], 0  ;;  %s1759_s21 = smov [#allocation2]   ;;  %s1711_s25 = scalar_lea.hbm %s1994_s2, 2560 }
   0x2   :  { %s22_s22 = sshll.u32 %s1759_s21, 4  ;;  %p1712_p0 = scmp.ne.s32.totalorder %s1994_s2, %s1711_s25  ;;  %s23_s22 = int_to_ptr.vmem [resolvable:$true] %s22_s22 }
   0x3   :  { %p1715_p1 = scmp.lt.u32.totalorder %s1711_s25, %s1994_s2 }
   0x5   :  { %p1717_p2 = pnand %p1715_p1, %p1712_p0 }
   0x7   :  { %1720 = shalt.err (!%p1717_p2)
}
   0x8   :  { %s1721_s30 = scalar_lea.vmem %s23_s22, 2560  ;;  %p1726_p4 = scmp.lt.s32.totalorder %s23_s22, %s23_s22 }
   0x9   :  { %p1722_p3 = scmp.ne.s32.totalorder %s23_s22, %s1721_s30  ;;  %p1727_p5 = scmp.lt.s32.totalorder %s1721_s30, %s1721_s30 }
   0xb   :  { %p1728_p6 = por %p1727_p5, %p1726_p4 }
   0xd   :  { %p1729_p7 = pnand %p1728_p6, %p1722_p3 }
   0xf   :  { %1732 = shalt.err (!%p1729_p7)
}
  0x10   :  { %s1760_s7 = smov 128   ;;  %s1761_s8 = smov 8  }
  0x11   :  { %28 = dma.hbm_to_vmem [thread:$0]  %s1994_s2, 2560, %s23_s22, [#allocation3], %s1760_s7, %s1760_s7, %s1761_s8  }
  0x12   :  { %1755 = dma.done.wait [#allocation3], 2560  }
  0x13   :  { %1756 = vsyncadd [#allocation3], 4294964736  ;;  %vm194_vm0 = vcmask 261120   ;;  %v46_v0 = vld [vmem:[%s1993_s1] sm:$0xff]  ;;  %v47_v1 = vld [vmem:[%s1993_s1 + $0x8] sm:$0xff]  ;;  %vm54_vm1 = vcmask 523264  }
  0x14   :  { %v48_v2 = vld [vmem:[%s1993_s1 + $0x10] sm:$0xff]  ;;  %v1575_v3 = vpack.c.bf16 %v47_v1, %v46_v0  ;;  %v49_v4 = vld [vmem:[%s1993_s1 + $0x18] sm:$0xff]  ;;  %1435 = vmatprep.mubr.msk.f32.mxu1 %vm194_vm0, %v46_v0  ;;  %v50_v6 = vld [vmem:[%s1993_s1 + $0x20] sm:$0xff] }
  0x15   :  { %v1579_v5 = vpack.c.bf16 %v49_v4, %v48_v2  ;;  %v51_v7 = vld [vmem:[%s1993_s1 + $0x28] sm:$0xff]  ;;  %v38_v8 = vld [vmem:[%s1992_s0] sm:$0xff]  ;;  %v52_v10 = vld [vmem:[%s1993_s1 + $0x30] sm:$0xff] }
  0x16   :  { %1576 = vmatprep.subr.bf16.mxu0 %v1575_v3  ;;  %1415 = vmatprep.mubr.msk.f32.mxu0 %vm54_vm1, %v38_v8  ;;  %v1583_v9 = vpack.c.bf16 %v51_v7, %v50_v6  ;;  %v189_v11 = vld [vmem:[#allocation2 + $0x20] sm:$0xff]  ;;  %v190_v12 = vld [vmem:[#allocation2 + $0x28] sm:$0xff]  ;;  %v53_v13 = vld [vmem:[%s1993_s1 + $0x38] sm:$0xff] }
  0x17   :  { %1578 = vmatpush3.bf16.msra.mxu0 %v1575_v3  ;;  %v1591_v14 = vpack.c.bf16 %v190_v12, %v189_v11  ;;  %v191_v15 = vld [vmem:[#allocation2 + $0x30] sm:$0xff]  ;;  %v192_v16 = vld [vmem:[#allocation2 + $0x38] sm:$0xff]  ;;  %v184_v18 = vld [vmem:[#allocation2] sm:$0xff]  ;;  %v1587_v20 = vpack.c.bf16 %v53_v13, %v52_v10 }
  0x18   :  { %1580 = vmatprep.subr.bf16.mxu0 %v1579_v5  ;;  %v1595_v17 = vpack.c.bf16 %v192_v16, %v191_v15  ;;  %v185_v19 = vld [vmem:[#allocation2 + $0x8] sm:$0xff]  ;;  %v186_v22 = vld [vmem:[#allocation2 + $0x10] sm:$0xff]  ;;  %v187_v23 = vld [vmem:[#allocation2 + $0x18] sm:$0xff] }
  0x19   :  { %1592 = vmatprep.subr.bf16.mxu1 %v1591_v14  ;;  %v1599_v21 = vpack.c.bf16 %v185_v19, %v184_v18  ;;  %v1603_v24 = vpack.c.bf16 %v187_v23, %v186_v22  ;;  %v1845_v25 = vld [vmem:[%s1992_s0 + $0x8] sm:$0xff]  ;;  %v1851_v26 = vld [vmem:[%s1992_s0 + $0x10] sm:$0xff]  ;;  %v1861_v27 = vld [vmem:[%s1992_s0 + $0x18] sm:$0xff] }
  0x1a   :  { %1594 = vmatpush3.bf16.msra.mxu1 %v1591_v14  ;;  %v1867_v28 = vld [vmem:[%s1992_s0 + $0x20] sm:$0xff]  ;;  %v1877_v29 = vld [vmem:[%s1992_s0 + $0x28] sm:$0xff]  ;;  %v1883_v30 = vld [vmem:[%s1992_s0 + $0x30] sm:$0xff] }
  0x1b   :  { %1582 = vmatpush3.bf16.msra.mxu0 %v1579_v5  ;;  %1596 = vmatprep.subr.bf16.mxu1 %v1595_v17  ;;  %v1893_v31 = vld [vmem:[%s1992_s0 + $0x38] sm:$0xff]  ;;  %v584_v32 = vld [vmem:[#allocation2 + $0x60] sm:$0xff]  ;;  %v585_v33 = vld [vmem:[#allocation2 + $0x68] sm:$0xff] }
  0x1c   :  { %1584 = vmatprep.subr.bf16.mxu0 %v1583_v9  ;;  %v1623_v34 = vpack.c.bf16 %v585_v33, %v584_v32  ;;  %v586_v43 = vld [vmem:[#allocation2 + $0x70] sm:$0xff]  ;;  %v587_v44 = vld [vmem:[#allocation2 + $0x78] sm:$0xff]  ;;  %v579_v46 = vld [vmem:[#allocation2 + $0x40] sm:$0xff] }
  0x1d   :  { %v1627_v45 = vpack.c.bf16 %v587_v44, %v586_v43  ;;  %v580_v47 = vld [vmem:[#allocation2 + $0x48] sm:$0xff]  ;;  %v1243_v49 = vld [vmem:[%s1995_s3] ss:$0 sm:$0xff]  ;;  %v581_v54 = vld [vmem:[#allocation2 + $0x50] sm:$0xff] }
  0x1e   :  { %1598 = vmatpush3.bf16.msra.mxu1 %v1595_v17  ;;  %v1631_v48 = vpack.c.bf16 %v580_v47, %v579_v46  ;;  %v582_v55 = vld [vmem:[#allocation2 + $0x58] sm:$0xff]  ;;  %v860_v17 = vld [vmem:[#allocation2 + $0x80] sm:$0xff]  ;;  %v861_v18 = vld [vmem:[#allocation2 + $0x88] sm:$0xff] }
  0x1f   :  { %1586 = vmatpush3.bf16.msra.mxu0 %v1583_v9  ;;  %1600 = vmatprep.subr.bf16.mxu1 %v1599_v21  ;;  %v1635_v61 = vpack.c.bf16 %v582_v55, %v581_v54  ;;  %v862_v19 = vld [vmem:[#allocation2 + $0x90] sm:$0xff]  ;;  %v1007_v32 = vld [vmem:[%s1996_s4 + $0x8] sm:$0xff]  ;;  %v1269_v54 = vld [vmem:[%s1995_s3 + $0x2] ss:$0 sm:$0xff] }
  0x20   :  { %1588 = vmatprep.subr.bf16.mxu0 %v1587_v20 }
  0x21   :  { %1436 = vmatmul.mubr.msk.f32.vlgmr.msra.gmra.mrb[0].mxu1 %vm194_vm0, %v47_v1 }
  0x22   :  { %1602 = vmatpush3.bf16.msra.mxu1 %v1599_v21  ;;  %1438 = vmatprep.mubr.msk.f32.mxu1 %vm194_vm0, %v48_v2  ;;  %v863_v21 = vld [vmem:[#allocation2 + $0x98] sm:$0xff] }
  0x23   :  { %1590 = vmatpush3.bf16.msra.mxu0 %v1587_v20  ;;  %1604 = vmatprep.subr.bf16.mxu1 %v1603_v24  ;;  %v1639_v20 = vpack.c.bf16 %v861_v18, %v860_v17  ;;  %v1643_v22 = vpack.c.bf16 %v863_v21, %v862_v19 }
  0x25   :  { %1439 = vmatmul.mubr.msk.f32.gmra.mrb[2].mxu1 %vm194_vm0, %v49_v4 }
  0x26   :  { %1416 = vmatmul.mubr.msk.f32.vlgmr.msra.gmra.mrb[0].mxu0 %vm54_vm1, %v1845_v25  ;;  %1441 = vmatprep.mubr.msk.f32.mxu1 %vm194_vm0, %v50_v6 }
  0x27   :  { %1418 = vmatprep.mubr.msk.f32.mxu0 %vm54_vm1, %v1851_v26  ;;  %1606 = vmatpush3.bf16.msra.mxu1 %v1603_v24 }
  0x28   :  { %1624 = vmatprep.subr.bf16.mxu1 %v1623_v34 }
  0x29   :  { %1442 = vmatmul.mubr.msk.f32.gmra.mrb[4].mxu1 %vm194_vm0, %v51_v7 }
  0x2a   :  { %1419 = vmatmul.mubr.msk.f32.gmra.mrb[2].mxu0 %vm54_vm1, %v1861_v27  ;;  %1444 = vmatprep.mubr.msk.f32.mxu1 %vm194_vm0, %v52_v10 }
  0x2b   :  { %1421 = vmatprep.mubr.msk.f32.mxu0 %vm54_vm1, %v1867_v28 }
  0x2d   :  { %1445 = vmatmul.mubr.msk.f32.gmra.mrb[6].mxu1 %vm194_vm0, %v53_v13 }
  0x2e   :  { %1422 = vmatmul.mubr.msk.f32.gmra.mrb[4].mxu0 %vm54_vm1, %v1877_v29 }
  0x2f   :  { %1424 = vmatprep.mubr.msk.f32.mxu0 %vm54_vm1, %v1883_v30 }
  0x32   :  { %1425 = vmatmul.mubr.msk.f32.gmra.mrb[6].mxu0 %vm54_vm1, %v1893_v31 }
  0x33   :  { %1483 = vmatprep.mubr.msk.f32.mxu0 %vm54_vm1, %v38_v8 }
  0xf9   :  { %v1417_v35 = vpop.f32.mrb[0].mxu0 }
  0xfa   :  { %v145_v36 = vpop.f32.mrb[1].mxu0 }
  0xfb   :  { %1455 = vmatprep.mubr.msk.f32.mxu1 %vm194_vm0, %v145_v36 }
  0xfc   :  { %1456 = vmatmul.mubr.msk.f32.vlgmr.msra.gmra.mrb[0].mxu1 %vm194_vm0, %v1417_v35 }
  0xfd   :  { %v1420_v37 = vpop.f32.mrb[2].mxu0  ;;  %1626 = vmatpush3.bf16.msra.mxu1 %v1623_v34  ;;  %v1268_v34 = vld [vmem:[%s1995_s3 + $0x1] ss:$0 sm:$0xff] }
  0xfe   :  { %v155_v38 = vpop.f32.mrb[3].mxu0  ;;  %1628 = vmatprep.subr.bf16.mxu1 %v1627_v45 }
  0xff   :  { %1458 = vmatprep.mubr.msk.f32.mxu1 %vm194_vm0, %v155_v38 }
 0x100   :  { %1459 = vmatmul.mubr.msk.f32.gmra.mrb[2].mxu1 %vm194_vm0, %v1420_v37 }
 0x101   :  { %v1423_v39 = vpop.f32.mrb[4].mxu0  ;;  %1630 = vmatpush3.bf16.msra.mxu1 %v1627_v45 }
 0x102   :  { %v165_v40 = vpop.f32.mrb[5].mxu0  ;;  %1632 = vmatprep.subr.bf16.mxu1 %v1631_v48 }
 0x103   :  { %1461 = vmatprep.mubr.msk.f32.mxu1 %vm194_vm0, %v165_v40 }
 0x104   :  { %1462 = vmatmul.mubr.msk.f32.gmra.mrb[4].mxu1 %vm194_vm0, %v1423_v39 }
 0x105   :  { %v1426_v41 = vpop.f32.mrb[6].mxu0 }
 0x106   :  { %v175_v42 = vpop.f32.mrb[7].mxu0 }
 0x107   :  { %1464 = vmatprep.mubr.msk.f32.mxu1 %vm194_vm0, %v175_v42 }
 0x108   :  { %1465 = vmatmul.mubr.msk.f32.gmra.mrb[6].mxu1 %vm194_vm0, %v1426_v41 }
 0x1cf   :  { %v1457_v50 = vpop.f32.mrb[0].mxu1 }
 0x1d0   :  { %v458_v51 = vadd.f32 %v1457_v50, %v1243_v49  ;;  %v414_v52 = vpop.f32.mrb[1].mxu1 }
 0x1d1   :  { %v457_v53 = vadd.f32 %v1243_v49, %v414_v52  ;;  %v1009_v52 = vld [vmem:[%s1996_s4 + $0x18] sm:$0xff] }
 0x1d2   :  { %v466_v56 = vmax.f32 %v458_v51, 0.0  ;;  %v1008_v51 = vld [vmem:[%s1996_s4 + $0x10] sm:$0xff] }
 0x1d3   :  { %v465_v57 = vmax.f32 %v457_v53, 0.0  ;;  %v1460_v58 = vpop.f32.mrb[2].mxu1  ;;  %v1651_v53 = vpack.c.bf16 %v1009_v52, %v1008_v51 }
 0x1d4   :  { %v460_v59 = vadd.f32 %v1460_v58, %v1243_v49  ;;  %v424_v60 = vpop.f32.mrb[3].mxu1 }
 0x1d5   :  { %v1607_v62 = vpack.c.bf16 %v466_v56, %v465_v57  ;;  %v459_v63 = vadd.f32 %v1243_v49, %v424_v60  ;;  %1503 = vmatprep.mubr.msk.f32.mxu1 %vm194_vm0, %v465_v57 }
 0x1d6   :  { %v468_v0 = vmax.f32 %v460_v59, 0.0  ;;  %1504 = vmatmul.mubr.msk.f32.vlgmr.msra.gmra.mrb[8].mxu1 %vm194_vm0, %v466_v56 }
 0x1d7   :  { %v467_v1 = vmax.f32 %v459_v63, 0.0  ;;  %v1463_v2 = vpop.f32.mrb[4].mxu1  ;;  %1608 = vmatprep.subr.bf16.mxu0 %v1607_v62  ;;  %1634 = vmatpush3.bf16.msra.mxu1 %v1631_v48 }
 0x1d8   :  { %v462_v3 = vadd.f32 %v1463_v2, %v1243_v49  ;;  %v434_v4 = vpop.f32.mrb[5].mxu1  ;;  %1610 = vmatpush3.bf16.msra.mxu0 %v1607_v62  ;;  %1636 = vmatprep.subr.bf16.mxu1 %v1635_v61 }
 0x1d9   :  { %v1611_v5 = vpack.c.bf16 %v468_v0, %v467_v1  ;;  %v461_v6 = vadd.f32 %v1243_v49, %v434_v4  ;;  %1506 = vmatprep.mubr.msk.f32.mxu1 %vm194_vm0, %v467_v1 }
 0x1da   :  { %v470_v7 = vmax.f32 %v462_v3, 0.0  ;;  %1507 = vmatmul.mubr.msk.f32.gmra.mrb[10].mxu1 %vm194_vm0, %v468_v0 }
 0x1db   :  { %v469_v8 = vmax.f32 %v461_v6, 0.0  ;;  %v1466_v9 = vpop.f32.mrb[6].mxu1  ;;  %1612 = vmatprep.subr.bf16.mxu0 %v1611_v5  ;;  %1638 = vmatpush3.bf16.msra.mxu1 %v1635_v61 }
 0x1dc   :  { %v464_v10 = vadd.f32 %v1466_v9, %v1243_v49  ;;  %v444_v11 = vpop.f32.mrb[7].mxu1  ;;  %1614 = vmatpush3.bf16.msra.mxu0 %v1611_v5  ;;  %1655 = vmatprep.subr.bf16.mxu1 %v1639_v20 }
 0x1dd   :  { %v1615_v12 = vpack.c.bf16 %v470_v7, %v469_v8  ;;  %v463_v13 = vadd.f32 %v1243_v49, %v444_v11  ;;  %1509 = vmatprep.mubr.msk.f32.mxu1 %vm194_vm0, %v469_v8 }
 0x1de   :  { %v472_v14 = vmax.f32 %v464_v10, 0.0  ;;  %1510 = vmatmul.mubr.msk.f32.gmra.mrb[12].mxu1 %vm194_vm0, %v470_v7 }
 0x1df   :  { %v471_v15 = vmax.f32 %v463_v13, 0.0  ;;  %1616 = vmatprep.subr.bf16.mxu0 %v1615_v12 }
 0x1e0   :  { %1618 = vmatpush3.bf16.msra.mxu0 %v1615_v12 }
 0x1e1   :  { %v1619_v16 = vpack.c.bf16 %v472_v14, %v471_v15  ;;  %1512 = vmatprep.mubr.msk.f32.mxu1 %vm194_vm0, %v471_v15  ;;  %v1278_v15 = vld [vmem:[%s1997_s5] ss:$0 sm:$0xff]  ;;  %s1762_s5 = smov [#allocation5]  }
 0x1e2   :  { %1513 = vmatmul.mubr.msk.f32.gmra.mrb[14].mxu1 %vm194_vm0, %v472_v14  ;;  %s1207_s30 = sshll.u32 %s1762_s5, 4  ;;  %s1208_s30 = int_to_ptr.vmem [resolvable:$true] %s1207_s30 }
 0x1e3   :  { %1620 = vmatprep.subr.bf16.mxu0 %v1619_v16  ;;  %s1733_s9 = scalar_lea.vmem %s1208_s30, 1024  ;;  %p1738_p9 = scmp.lt.s32.totalorder %s1208_s30, %s1208_s30 }
 0x1e4   :  { %1622 = vmatpush3.bf16.msra.mxu0 %v1619_v16  ;;  %p1734_p8 = scmp.ne.s32.totalorder %s1208_s30, %s1733_s9  ;;  %p1739_p10 = scmp.lt.s32.totalorder %s1733_s9, %s1733_s9 }
 0x1e5   :  { %1640 = vmatprep.subr.bf16.mxu0 %v1639_v20 }
 0x1e6   :  { %p1740_p11 = por %p1739_p10, %p1738_p9 }
 0x1e7   :  { %1484 = vmatmul.mubr.msk.f32.vlgmr.msra.gmra.mrb[8].mxu0 %vm54_vm1, %v1845_v25 }
 0x1e8   :  { %1486 = vmatprep.mubr.msk.f32.mxu0 %vm54_vm1, %v1851_v26  ;;  %1642 = vmatpush3.bf16.msra.mxu0 %v1639_v20  ;;  %p1741_p12 = pnand %p1740_p11, %p1734_p8 }
 0x1e9   :  { %1644 = vmatprep.subr.bf16.mxu0 %v1643_v22 }
 0x1eb   :  { %1487 = vmatmul.mubr.msk.f32.gmra.mrb[10].mxu0 %vm54_vm1, %v1861_v27 }
 0x1ec   :  { %1489 = vmatprep.mubr.msk.f32.mxu0 %vm54_vm1, %v1867_v28  ;;  %1646 = vmatpush3.bf16.msra.mxu0 %v1643_v22 }
 0x1ef   :  { %1490 = vmatmul.mubr.msk.f32.gmra.mrb[12].mxu0 %vm54_vm1, %v1877_v29 }
 0x1f0   :  { %1492 = vmatprep.mubr.msk.f32.mxu0 %vm54_vm1, %v1883_v30 }
 0x1f3   :  { %1493 = vmatmul.mubr.msk.f32.gmra.mrb[14].mxu0 %vm54_vm1, %v1893_v31  ;;  %v1006_v31 = vld [vmem:[%s1996_s4] sm:$0xff] }
 0x1f4   :  { %v1647_v33 = vpack.c.bf16 %v1007_v32, %v1006_v31 }
 0x1f6   :  { %1648 = vmatprep.subr.bf16.mxu0 %v1647_v33 }
 0x2ba   :  { %v1485_v23 = vpop.f32.mrb[8].mxu0 }
 0x2bb   :  { %v539_v24 = vpop.f32.mrb[9].mxu0 }
 0x2bc   :  { %1523 = vmatprep.mubr.msk.f32.mxu1 %vm194_vm0, %v539_v24 }
 0x2bd   :  { %1524 = vmatmul.mubr.msk.f32.vlgmr.msra.gmra.mrb[8].mxu1 %vm194_vm0, %v1485_v23 }
 0x2be   :  { %v1488_v25 = vpop.f32.mrb[10].mxu0  ;;  %1657 = vmatpush3.bf16.msra.mxu1 %v1639_v20 }
 0x2bf   :  { %v549_v26 = vpop.f32.mrb[11].mxu0  ;;  %1656 = vmatprep.subr.bf16.mxu1 %v1643_v22 }
 0x2c0   :  { %1526 = vmatprep.mubr.msk.f32.mxu1 %vm194_vm0, %v549_v26 }
 0x2c1   :  { %1527 = vmatmul.mubr.msk.f32.gmra.mrb[10].mxu1 %vm194_vm0, %v1488_v25 }
 0x2c2   :  { %v1491_v27 = vpop.f32.mrb[12].mxu0  ;;  %1658 = vmatpush3.bf16.msra.mxu1 %v1643_v22 }
 0x2c3   :  { %v559_v28 = vpop.f32.mrb[13].mxu0 }
 0x2c4   :  { %1529 = vmatprep.mubr.msk.f32.mxu1 %vm194_vm0, %v559_v28 }
 0x2c5   :  { %1530 = vmatmul.mubr.msk.f32.gmra.mrb[12].mxu1 %vm194_vm0, %v1491_v27 }
 0x2c6   :  { %v1494_v29 = vpop.f32.mrb[14].mxu0 }
 0x2c7   :  { %v569_v30 = vpop.f32.mrb[15].mxu0 }
 0x2c8   :  { %1532 = vmatprep.mubr.msk.f32.mxu1 %vm194_vm0, %v569_v30 }
 0x2c9   :  { %1533 = vmatmul.mubr.msk.f32.gmra.mrb[14].mxu1 %vm194_vm0, %v1494_v29 }
 0x390   :  { %v1525_v35 = vpop.f32.mrb[8].mxu1 }
 0x391   :  { %v808_v36 = vpop.f32.mrb[9].mxu1  ;;  %v852_v38 = vadd.f32 %v1525_v35, %v1268_v34 }
 0x392   :  { %v851_v37 = vadd.f32 %v1268_v34, %v808_v36 }
 0x394   :  { %v1528_v39 = vpop.f32.mrb[10].mxu1  ;;  %1543 = vmatprep.mubr.msk.f32.mxu0 %vm194_vm0, %v851_v37 }
 0x395   :  { %v818_v40 = vpop.f32.mrb[11].mxu1  ;;  %1544 = vmatmul.mubr.msk.f32.vlgmr.msra.gmra.mrb[16].mxu0 %vm194_vm0, %v852_v38  ;;  %v854_v42 = vadd.f32 %v1528_v39, %v1268_v34 }
 0x396   :  { %v853_v41 = vadd.f32 %v1268_v34, %v818_v40  ;;  %1650 = vmatpush3.bf16.msra.mxu0 %v1647_v33 }
 0x397   :  { %1652 = vmatprep.subr.bf16.mxu0 %v1651_v53 }
 0x398   :  { %v1531_v43 = vpop.f32.mrb[12].mxu1  ;;  %1546 = vmatprep.mubr.msk.f32.mxu0 %vm194_vm0, %v853_v41 }
 0x399   :  { %v828_v44 = vpop.f32.mrb[13].mxu1  ;;  %1547 = vmatmul.mubr.msk.f32.gmra.mrb[18].mxu0 %vm194_vm0, %v854_v42  ;;  %v856_v46 = vadd.f32 %v1531_v43, %v1268_v34 }
 0x39a   :  { %v855_v45 = vadd.f32 %v1268_v34, %v828_v44  ;;  %1654 = vmatpush3.bf16.msra.mxu0 %v1651_v53 }
 0x39c   :  { %v1534_v47 = vpop.f32.mrb[14].mxu1  ;;  %1549 = vmatprep.mubr.msk.f32.mxu0 %vm194_vm0, %v855_v45 }
 0x39d   :  { %v838_v48 = vpop.f32.mrb[15].mxu1  ;;  %1550 = vmatmul.mubr.msk.f32.gmra.mrb[20].mxu0 %vm194_vm0, %v856_v46  ;;  %v858_v50 = vadd.f32 %v1534_v47, %v1268_v34 }
 0x39e   :  { %v857_v49 = vadd.f32 %v1268_v34, %v838_v48 }
 0x3a0   :  { %1552 = vmatprep.mubr.msk.f32.mxu1 %vm194_vm0, %v857_v49 }
 0x3a1   :  { %1553 = vmatmul.mubr.msk.f32.vlgmr.msra.gmra.mrb[16].mxu1 %vm194_vm0, %v858_v50 }
 0x468   :  { %v1545_v55 = vpop.f32.mrb[16].mxu0 }
 0x469   :  { %v965_v56 = vadd.f32 %v1545_v55, %v1269_v54  ;;  %v959_v57 = vpop.f32.mrb[17].mxu0 }
 0x46a   :  { %v960_v58 = vadd.f32 %v1269_v54, %v959_v57 }
 0x46b   :  { %v999_v61 = vmax.f32 %v965_v56, 0.0 }
 0x46c   :  { %v998_v59 = vmax.f32 %v960_v58, 0.0  ;;  %v1548_v60 = vpop.f32.mrb[18].mxu0 }
 0x46d   :  { %v975_v62 = vadd.f32 %v1548_v60, %v1269_v54  ;;  %v969_v63 = vpop.f32.mrb[19].mxu0 }
 0x46e   :  { %v970_v0 = vadd.f32 %v1269_v54, %v969_v63  ;;  %1563 = vmatprep.mubr.msk.f32.mxu0 %vm194_vm0, %v998_v59 }
 0x46f   :  { %1564 = vmatmul.mubr.msk.f32.vlgmr.msra.gmra.mrb[22].mxu0 %vm194_vm0, %v999_v61  ;;  %v1001_v3 = vmax.f32 %v975_v62, 0.0 }
 0x470   :  { %v1000_v1 = vmax.f32 %v970_v0, 0.0  ;;  %v1551_v2 = vpop.f32.mrb[20].mxu0 }
 0x471   :  { %v985_v4 = vadd.f32 %v1551_v2, %v1269_v54  ;;  %v979_v5 = vpop.f32.mrb[21].mxu0 }
 0x472   :  { %v980_v6 = vadd.f32 %v1269_v54, %v979_v5  ;;  %1566 = vmatprep.mubr.msk.f32.mxu0 %vm194_vm0, %v1000_v1 }
 0x473   :  { %1567 = vmatmul.mubr.msk.f32.gmra.mrb[24].mxu0 %vm194_vm0, %v1001_v3  ;;  %v1003_v9 = vmax.f32 %v985_v4, 0.0 }
 0x474   :  { %v1002_v7 = vmax.f32 %v980_v6, 0.0  ;;  %v1554_v8 = vpop.f32.mrb[16].mxu1 }
 0x475   :  { %v995_v10 = vadd.f32 %v1554_v8, %v1269_v54  ;;  %v989_v11 = vpop.f32.mrb[17].mxu1 }
 0x476   :  { %v990_v12 = vadd.f32 %v1269_v54, %v989_v11  ;;  %1569 = vmatprep.mubr.msk.f32.mxu0 %vm194_vm0, %v1002_v7 }
 0x477   :  { %1570 = vmatmul.mubr.msk.f32.gmra.mrb[26].mxu0 %vm194_vm0, %v1003_v9  ;;  %v1005_v14 = vmax.f32 %v995_v10, 0.0 }
 0x478   :  { %v1004_v13 = vmax.f32 %v990_v12, 0.0 }
 0x47a   :  { %1572 = vmatprep.mubr.msk.f32.mxu0 %vm194_vm0, %v1004_v13 }
 0x47b   :  { %1573 = vmatmul.mubr.msk.f32.gmra.mrb[28].mxu0 %vm194_vm0, %v1005_v14 }
 0x542   :  { %v1565_v16 = vpop.f32.mrb[22].mxu0 }
 0x543   :  { %v1113_v17 = vadd.f32 %v1565_v16, %v1278_v15  ;;  %v1107_v18 = vpop.f32.mrb[23].mxu0 }
 0x544   :  { %v1108_v19 = vadd.f32 %v1278_v15, %v1107_v18 }
 0x545   :  { %v1288_v20 = vmul.f32 -1.442695, %v1113_v17 }
 0x546   :  { %v1287_v21 = vmul.f32 -1.442695, %v1108_v19  ;;  %v1568_v22 = vpop.f32.mrb[24].mxu0 }
 0x547   :  { %1679 = vpow2.f32 %v1288_v20  ;;  %v1123_v23 = vadd.f32 %v1568_v22, %v1278_v15  ;;  %v1117_v24 = vpop.f32.mrb[25].mxu0 }
 0x548   :  { %1681 = vpow2.f32 %v1287_v21  ;;  %v1118_v25 = vadd.f32 %v1278_v15, %v1117_v24 }
 0x549   :  { %v1290_v26 = vmul.f32 -1.442695, %v1123_v23 }
 0x54a   :  { %v1289_v27 = vmul.f32 -1.442695, %v1118_v25  ;;  %v1571_v28 = vpop.f32.mrb[26].mxu0 }
 0x54b   :  { %1683 = vpow2.f32 %v1290_v26  ;;  %v1133_v29 = vadd.f32 %v1571_v28, %v1278_v15  ;;  %v1127_v30 = vpop.f32.mrb[27].mxu0 }
 0x54c   :  { %1685 = vpow2.f32 %v1289_v27  ;;  %v1128_v31 = vadd.f32 %v1278_v15, %v1127_v30 }
 0x54d   :  { %v1292_v32 = vmul.f32 -1.442695, %v1133_v29 }
 0x54e   :  { %v1291_v33 = vmul.f32 -1.442695, %v1128_v31  ;;  %v1574_v34 = vpop.f32.mrb[28].mxu0 }
 0x54f   :  { %1687 = vpow2.f32 %v1292_v32  ;;  %v1143_v35 = vadd.f32 %v1574_v34, %v1278_v15  ;;  %v1137_v36 = vpop.f32.mrb[29].mxu0 }
 0x550   :  { %1689 = vpow2.f32 %v1291_v33  ;;  %v1138_v37 = vadd.f32 %v1278_v15, %v1137_v36 }
 0x551   :  { %v1680_v38 = vpop.eup %1679  ;;  %v1294_v39 = vmul.f32 -1.442695, %v1143_v35 }
 0x552   :  { %v1682_v40 = vpop.eup %1681  ;;  %v1171_v41 = vadd.f32 1.0, %v1680_v38  ;;  %v1293_v42 = vmul.f32 -1.442695, %v1138_v37 }
 0x553   :  { %v1170_v43 = vadd.f32 1.0, %v1682_v40  ;;  %1691 = vpow2.f32 %v1294_v39 }
 0x554   :  { %1693 = vrcp.f32 %v1171_v41 }
 0x555   :  { %v1684_v44 = vpop.eup %1683  ;;  %1695 = vrcp.f32 %v1170_v43 }
 0x556   :  { %v1686_v45 = vpop.eup %1685  ;;  %v1173_v46 = vadd.f32 1.0, %v1684_v44  ;;  %1697 = vpow2.f32 %v1293_v42 }
 0x557   :  { %v1172_v47 = vadd.f32 1.0, %v1686_v45 }
 0x558   :  { %1699 = vrcp.f32 %v1173_v46 }
 0x559   :  { %v1688_v48 = vpop.eup %1687  ;;  %1701 = vrcp.f32 %v1172_v47 }
 0x55a   :  { %v1690_v49 = vpop.eup %1689  ;;  %v1175_v50 = vadd.f32 1.0, %v1688_v48 }
 0x55b   :  { %v1174_v51 = vadd.f32 1.0, %v1690_v49 }
 0x55c   :  { %1703 = vrcp.f32 %v1175_v50 }
 0x55d   :  { %v1692_v52 = vpop.eup %1691  ;;  %1705 = vrcp.f32 %v1174_v51 }
 0x55e   :  { %v1694_v53 = vpop.eup %1693  ;;  %v1177_v54 = vadd.f32 1.0, %v1692_v52 }
 0x55f   :  { %v1696_v55 = vpop.eup %1695  ;;  %1195 = vst [vmem:[#allocation5 + $0x8] sm:$0xff] %v1694_v53 }
 0x560   :  { %v1698_v56 = vpop.eup %1697  ;;  %1194 = vst [vmem:[#allocation5] sm:$0xff] %v1696_v55  ;;  %1707 = vrcp.f32 %v1177_v54 }
 0x561   :  { %v1176_v57 = vadd.f32 1.0, %v1698_v56 }
 0x562   :  { %v1700_v58 = vpop.eup %1699 }
 0x563   :  { %v1702_v59 = vpop.eup %1701  ;;  %1197 = vst [vmem:[#allocation5 + $0x18] sm:$0xff] %v1700_v58  ;;  %1709 = vrcp.f32 %v1176_v57 }
 0x564   :  { %1196 = vst [vmem:[#allocation5 + $0x10] sm:$0xff] %v1702_v59 }
 0x566   :  { %v1704_v60 = vpop.eup %1703 }
 0x567   :  { %v1706_v61 = vpop.eup %1705  ;;  %1199 = vst [vmem:[#allocation5 + $0x28] sm:$0xff] %v1704_v60 }
 0x568   :  { %1198 = vst [vmem:[#allocation5 + $0x20] sm:$0xff] %v1706_v61 }
 0x56a   :  { %v1708_v62 = vpop.eup %1707 }
 0x56b   :  { %1201 = vst [vmem:[#allocation5 + $0x38] sm:$0xff] %v1708_v62 }
 0x56d   :  { %v1710_v63 = vpop.eup %1709 }
 0x56e   :  { %1200 = vst [vmem:[#allocation5 + $0x30] sm:$0xff] %v1710_v63 }
 0x56f   :  { %1744 = shalt.err (!%p1741_p12)
}
 0x570   :  { %s1745_s12 = scalar_lea.hbm %s1998_s6, 1024 }
 0x571   :  { %p1746_p13 = scmp.ne.s32.totalorder %s1998_s6, %s1745_s12  ;;  %p1749_p0 = scmp.lt.u32.totalorder %s1745_s12, %s1998_s6 }
 0x573   :  { %p1751_p1 = pnand %p1749_p0, %p1746_p13 }
 0x575   :  { %1754 = shalt.err (!%p1751_p1)
}
 0x576   :  { %1213 = dma.vmem_to_hbm [thread:$0]  %s1208_s30, 1024, %s1998_s6, [#allocation4], %s1760_s7, %s1760_s7, %s1761_s8  }
 0x577   :  { %1757 = dma.done.wait [#allocation4], 1024  }
 0x578   :  { %1758 = vsyncadd [#allocation4], 4294966272 }
 0x579   :  { %1217 = vsyncpa [#allocation3], 1 }
 0x57a   :  { %1218 = vsyncpa [#allocation4], 1 }

</bundles_post_ra>
